<compile_context>
chip_gen: v5e
topology: v5e:2x2
jax: 0.10.0
libtpu: 0.0.40
codegen_flags: <defaults>
</compile_context>

<pallas_src>
import jax
import jax.numpy as jnp
from jax.experimental import pallas as pl
from jax.experimental.pallas import tpu as pltpu


def product_kernel(x_ref, w_ref, b_ref, o_ref):
    """One fused step.

    x_ref : (B, K)  bf16   -- full input, all model slices concatenated
    w_ref : (K, Dt) bf16   -- vstack of per-model weights (or a D-tile of it)
    b_ref : (1, Dt) f32    -- pre-summed bias (or a D-tile of it)
    o_ref : (B, Dt) f32
    """
    acc = jnp.dot(x_ref[...], w_ref[...], preferred_element_type=jnp.float32)
    o_ref[...] = (acc + b_ref[...]).astype(o_ref.dtype)


def pack_product_params(w, b):
    """Hoist out of the hot path: vstack + bf16-cast weights, pre-sum biases.

    w: [M, N_j, D], b: [M, 1, D] -> (w_flat [M*N_j, D] bf16, b_sum [1, D] f32)
    """
    M, N_j, D = w.shape
    w_flat = w.reshape(M * N_j, D).astype(jnp.bfloat16)
    b_sum = jnp.sum(b.astype(jnp.float32), axis=0)
    return w_flat, b_sum


def product_forward_packed(x, w_flat, b_sum, *, d_tile=None):
    """x: [B, K] (any float), w_flat: [K, D] bf16, b_sum: [1, D] f32 -> [B, D] f32."""
    B, K = x.shape
    K2, D = w_flat.shape
    assert K == K2

    x_bf16 = x.astype(jnp.bfloat16)

    cost = pl.CostEstimate(
        flops=2 * B * K * D,
        bytes_accessed=(B * K + K * D) * 2 + (D + B * D) * 4,
        transcendentals=0,
    )
    vmem = pltpu.MemorySpace.VMEM

    # Auto-tile over D once the resident bf16 weight slab gets large enough to
    # crowd the scoped VMEM limit (matters first on v7x: 64 MiB physical,
    # 32 MiB default scope).  At toy sizes the grid-free path is used.
    if d_tile is None and (K * D * 2 > 8 * 1024 * 1024) and D % 128 == 0:
        d_tile = 512 if D % 512 == 0 else 128

    if d_tile is None:
        # Grid-free: everything resident in VMEM, single kernel invocation.
        return pl.pallas_call(
            product_kernel,
            out_shape=jax.ShapeDtypeStruct((B, D), jnp.float32),
            in_specs=[
                pl.BlockSpec(memory_space=vmem),
                pl.BlockSpec(memory_space=vmem),
                pl.BlockSpec(memory_space=vmem),
            ],
            out_specs=pl.BlockSpec(memory_space=vmem),
            cost_estimate=cost,
        )(x_bf16, w_flat, b_sum)

    # D-tiled path: independent output columns, double-buffered weight tiles,
    # "parallel" so v7x can shard the grid across its two TensorCores.
    assert D % d_tile == 0 and d_tile % 128 == 0
    grid = (D // d_tile,)
    return pl.pallas_call(
        product_kernel,
        out_shape=jax.ShapeDtypeStruct((B, D), jnp.float32),
        grid=grid,
        in_specs=[
            pl.BlockSpec((B, K), lambda j: (0, 0)),
            pl.BlockSpec((K, d_tile), lambda j: (0, j)),
            pl.BlockSpec((1, d_tile), lambda j: (0, j)),
        ],
        out_specs=pl.BlockSpec((B, d_tile), lambda j: (0, j)),
        compiler_params=pltpu.CompilerParams(dimension_semantics=("parallel",)),
        cost_estimate=cost,
    )(x_bf16, w_flat, b_sum)


def product_forward(x, w, b, *, d_tile=None):
    """Full Product forward.  x: [B, M*N_j], w: [M, N_j, D], b: [M, 1, D] -> [B, D].

    Equivalent to the PyTorch Product forward with affine sub-models:
    slice -> per-model matmul+bias -> stack -> sum over models.
    In a real pipeline call `pack_product_params` once and reuse the packed
    weights across steps; it is inlined here for the standalone test.
    """
    B, N_total = x.shape
    M, N_j, D = w.shape
    assert N_total == M * N_j
    w_flat, b_sum = pack_product_params(w, b)
    return product_forward_packed(x, w_flat, b_sum, d_tile=d_tile)


def product_reference(x, w, b):
    """Pure-JAX f32 reference mirroring the PyTorch loop + stack + sum."""
    M, N_j, D = w.shape
    ys = []
    offset = 0
    for j in range(M):
        xs = x[:, offset:offset + N_j]
        ys.append(xs @ w[j] + b[j])   # b[j] is (1, D), broadcasts over batch
        offset += N_j
    return jnp.sum(jnp.stack(ys, 0), axis=0)


if __name__ == "__main__":
    key = jax.random.PRNGKey(0)
    kx, kw, kb, kx2, kw2, kb2 = jax.random.split(key, 6)

    # --- Test 1: toy shapes, grid-free whole-array path -------------------
    # m = 3 sub-models, each consuming N_j = 128 features, output dim D = 128.
    B, M, N_j, D = 8, 3, 128, 128
    x = jax.random.normal(kx, (B, M * N_j), dtype=jnp.float32)
    w = jax.random.normal(kw, (M, N_j, D), dtype=jnp.float32) * 0.05
    b = jax.random.normal(kb, (M, 1, D), dtype=jnp.float32) * 0.1

    y = jax.block_until_ready(jax.jit(product_forward)(x, w, b))
    y_ref = product_reference(x, w, b)
    assert y.shape == (B, D)
    # bf16 inputs / f32 accumulation diverge from the pure-f32 reference by
    # O(1e-2) relative; tolerance loosened accordingly (per review).
    assert jnp.allclose(y, y_ref, atol=5e-2, rtol=5e-2), "mismatch vs reference (grid-free path)"

    # --- Test 2: D-tiled path (grid over independent output columns) ------
    D2 = 256
    x2 = jax.random.normal(kx2, (B, M * N_j), dtype=jnp.float32)
    w2 = jax.random.normal(kw2, (M, N_j, D2), dtype=jnp.float32) * 0.05
    b2 = jax.random.normal(kb2, (M, 1, D2), dtype=jnp.float32) * 0.1

    y2 = jax.block_until_ready(product_forward(x2, w2, b2, d_tile=128))
    y2_ref = product_reference(x2, w2, b2)
    assert y2.shape == (B, D2)
    assert jnp.allclose(y2, y2_ref, atol=5e-2, rtol=5e-2), "mismatch vs reference (tiled path)"

    print("KERNEL_OK")
</pallas_src>

<mosaic_0001>
module attributes {stable_mosaic.version = 11 : i64} {
  func.func @product_kernel(%arg0: memref<8x384xbf16, #tpu.memory_space<vmem>>, %arg1: memref<384x128xbf16, #tpu.memory_space<vmem>>, %arg2: memref<1x128xf32, #tpu.memory_space<vmem>>, %arg3: memref<8x128xf32, #tpu.memory_space<vmem>>) attributes {dimension_semantics = [], scalar_prefetch = 0 : i64, scratch_operands = 0 : i64, tpu.core_type = #tpu.core_type<tc>} {
    %c0 = arith.constant 0 : index
    %c0_0 = arith.constant 0 : index
    %0 = vector.load %arg0[%c0, %c0_0] : memref<8x384xbf16, #tpu.memory_space<vmem>>, vector<8x384xbf16>
    %c0_1 = arith.constant 0 : index
    %c0_2 = arith.constant 0 : index
    %1 = vector.load %arg1[%c0_1, %c0_2] : memref<384x128xbf16, #tpu.memory_space<vmem>>, vector<384x128xbf16>
    %cst = arith.constant dense<0.000000e+00> : vector<8x128xf32>
    %2 = tpu.matmul %0, %1, %cst {dimension_numbers = #tpu.dot_dimension_numbers<[1], [0], [0], [1], [0, 0, 1, 1], [], []>} : vector<8x384xbf16>, vector<384x128xbf16>, vector<8x128xf32> -> vector<8x128xf32>
    %c0_3 = arith.constant 0 : index
    %c0_4 = arith.constant 0 : index
    %3 = vector.load %arg2[%c0_3, %c0_4] : memref<1x128xf32, #tpu.memory_space<vmem>>, vector<1x128xf32>
    %4 = vector.broadcast %3 : vector<1x128xf32> to vector<8x128xf32>
    %5 = arith.addf %2, %4 : vector<8x128xf32>
    %c0_5 = arith.constant 0 : index
    %c0_6 = arith.constant 0 : index
    %6 = vector.load %arg3[%c0_5, %c0_6] : memref<8x128xf32, #tpu.memory_space<vmem>>, vector<8x128xf32>
    tpu.vector_store %arg3[%c0_5, %c0_6], %5 {strides = array<i32>} : memref<8x128xf32, #tpu.memory_space<vmem>>, vector<8x128xf32>,
    return
  }
}

</mosaic_0001>

<bundles_post_ra>
// kernel: product_forward.1
= control target key start
LH: loop header
LB: loop body
LE: loop exit
PB: predicated region body
PF: predicated region fallthrough
CT: control target
= control target key end

     0   :  { %s533_s0 = inlined_call_operand.vmem [shape: bf16[8,384], index: 0, kind: input, shape index: {}]   ;;  %s534_s1 = inlined_call_operand.vmem [shape: bf16[384,128], index: 1, kind: input, shape index: {}]   ;;  %s535_s2 = inlined_call_operand.vmem [shape: f32[1,128], index: 2, kind: input, shape index: {}]   ;;  %s536_s3 = inlined_call_operand.hbm [shape: f32[8,128], index: 3, kind: output, shape index: {}]  }
   0x1   :  { %v383_v0 = vld [vmem:[%s534_s1 + $0x38] sm:$0xff]  ;;  %v382_v3 = vld [vmem:[%s534_s1 + $0x30] sm:$0xff]  ;;  %v381_v6 = vld [vmem:[%s534_s1 + $0x28] sm:$0xff] }
   0x2   :  { %v391_v1 = vld [vmem:[%s534_s1 + $0x78] sm:$0xff]  ;;  %224 = vmatpush.bf16.msra.mxu0 %v383_v0  ;;  %v390_v4 = vld [vmem:[%s534_s1 + $0x70] sm:$0xff]  ;;  %v389_v7 = vld [vmem:[%s534_s1 + $0x68] sm:$0xff] }
   0x3   :  { %v399_v2 = vld [vmem:[%s534_s1 + $0xb8] sm:$0xff]  ;;  %237 = vmatpush.bf16.msra.mxu1 %v391_v1  ;;  %v398_v5 = vld [vmem:[%s534_s1 + $0xb0] sm:$0xff]  ;;  %v397_v8 = vld [vmem:[%s534_s1 + $0xa8] sm:$0xff] }
   0x4   :  { %250 = vmatpush.bf16.msra.mxu2 %v399_v2 }
   0x6   :  { %225 = vmatpush.bf16.msra.mxu0 %v382_v3 }
   0x7   :  { %238 = vmatpush.bf16.msra.mxu1 %v390_v4 }
   0x8   :  { %251 = vmatpush.bf16.msra.mxu2 %v398_v5 }
   0x9   :  { %8 = vsyncpa [#allocation3], 0  ;;  %v380_v9 = vld [vmem:[%s534_s1 + $0x20] sm:$0xff]  ;;  %v379_v12 = vld [vmem:[%s534_s1 + $0x18] sm:$0xff]  ;;  %s428_s11 = smov [#allocation2]   ;;  %s271_s14 = sshll.u32 %s536_s3, 4  ;;  %s272_s14 = int_to_ptr.hbm [resolvable:$true] %s271_s14 }
   0xa   :  { %226 = vmatpush.bf16.msra.mxu0 %v381_v6  ;;  %v388_v10 = vld [vmem:[%s534_s1 + $0x60] sm:$0xff]  ;;  %v387_v13 = vld [vmem:[%s534_s1 + $0x58] sm:$0xff]  ;;  %v378_v15 = vld [vmem:[%s534_s1 + $0x10] sm:$0xff]  ;;  %s269_s12 = sshll.u32 %s428_s11, 4  ;;  %s270_s12 = int_to_ptr.vmem [resolvable:$true] %s269_s12 }
   0xb   :  { %239 = vmatpush.bf16.msra.mxu1 %v389_v7  ;;  %v396_v11 = vld [vmem:[%s534_s1 + $0xa0] sm:$0xff]  ;;  %v395_v14 = vld [vmem:[%s534_s1 + $0x98] sm:$0xff]  ;;  %v386_v16 = vld [vmem:[%s534_s1 + $0x50] sm:$0xff] }
   0xc   :  { %252 = vmatpush.bf16.msra.mxu2 %v397_v8  ;;  %v394_v17 = vld [vmem:[%s534_s1 + $0x90] sm:$0xff]  ;;  %v377_v18 = vld [vmem:[%s534_s1 + $0x8] sm:$0xff]  ;;  %v15_v20 = vld [vmem:[%s533_s0] sm:$0xff] }
   0xd   :  { %v385_v19 = vld [vmem:[%s534_s1 + $0x48] sm:$0xff]  ;;  %v71_v23 = vunpack.c.l.b16 %v15_v20  ;;  %v72_v24 = vunpack.c.h.b16 %v15_v20  ;;  %v376_v25 = vld [vmem:[%s534_s1] sm:$0xff] }
   0xe   :  { %227 = vmatpush.bf16.msra.mxu0 %v380_v9  ;;  %v393_v21 = vld [vmem:[%s534_s1 + $0x88] sm:$0xff]  ;;  %v384_v26 = vld [vmem:[%s534_s1 + $0x40] sm:$0xff] }
   0xf   :  { %240 = vmatpush.bf16.msra.mxu1 %v388_v10  ;;  %v16_v22 = vld [vmem:[%s533_s0 + $0x8] sm:$0xf]  ;;  %v392_v28 = vld [vmem:[%s534_s1 + $0x80] sm:$0xff]  ;;  %v74_v29 = vpack.c.b16 %v71_v23, %v71_v23  ;;  %v75_v30 = vpack.c.b16 %v72_v24, %v72_v24 }
  0x10   :  { %253 = vmatpush.bf16.msra.mxu2 %v396_v11  ;;  %v73_v27 = vunpack.c.l.b16 %v16_v22  ;;  %v401_v32 = vld [vmem:[%s535_s2] ss:$0 sm:$0xff] }
  0x12   :  { %228 = vmatpush.bf16.msra.mxu0 %v379_v12  ;;  %v76_v31 = vpack.c.b16 %v73_v27, %v73_v27 }
  0x13   :  { %241 = vmatpush.bf16.msra.mxu1 %v387_v13 }
  0x14   :  { %254 = vmatpush.bf16.msra.mxu2 %v395_v14 }
  0x16   :  { %229 = vmatpush.bf16.msra.mxu0 %v378_v15 }
  0x17   :  { %242 = vmatpush.bf16.msra.mxu1 %v386_v16 }
  0x18   :  { %255 = vmatpush.bf16.msra.mxu2 %v394_v17 }
  0x1a   :  { %230 = vmatpush.bf16.msra.mxu0 %v377_v18 }
  0x1b   :  { %243 = vmatpush.bf16.msra.mxu1 %v385_v19 }
  0x1c   :  { %256 = vmatpush.bf16.msra.mxu2 %v393_v21 }
  0x1e   :  { %231 = vmatpush.bf16.msra.mxu0 %v376_v25 }
  0x1f   :  { %244 = vmatpush.bf16.msra.mxu1 %v384_v26 }
  0x20   :  { %257 = vmatpush.bf16.msra.mxu2 %v392_v28 }
  0x21   :  { %232 = vmatmul.bf16.vlgmr.msra.gmra.mxu0 %v74_v29 }
  0x22   :  { %245 = vmatmul.bf16.vlgmr.msra.gmra.mxu1 %v75_v30 }
  0x23   :  { %258 = vmatmul.bf16.vlgmr.msra.gmra.mxu2 %v76_v31 }
  0x9e   :  { %v233_v33 = vpop.f32.mrf.mxu0 }
  0x9f   :  { %v246_v34 = vpop.f32.mrf.mxu1  ;;  %v234_v35 = vadd.f32 %v401_v32, %v233_v33 }
  0xa1   :  { %v247_v36 = vadd.f32 %v246_v34, %v234_v35 }
  0xa6   :  { %v259_v37 = vpop.f32.mrf.mxu2  ;;  %v235_v39 = vpop.f32.mrf.mxu0 }
  0xa7   :  { %v260_v38 = vadd.f32 %v259_v37, %v247_v36  ;;  %v248_v40 = vpop.f32.mrf.mxu1 }
  0xa9   :  { %263 = vst [vmem:[#allocation2] sm:$0xff] %v260_v38 }
  0xaa   :  { %274 = dma.vmem_to_hbm [thread:$0]  %s270_s12, 128, %s272_s14, [#allocation3]  }
  0xae   :  { %v261_v41 = vpop.f32.mrf.mxu2 }
  0xaf   :  { %426 = dma.done.wait [#allocation3], 128  }
  0xb0   :  { %427 = vsyncadd [#allocation3], 4294967168 }
  0xb1   :  { %279 = vsyncpa [#allocation3], 1 }

</bundles_post_ra>
